<compile_context>
chip_gen: v7x
topology: tpu7x:2x2x1
jax: 0.10.0
libtpu: 0.0.40
codegen_flags: <defaults>
</compile_context>

<pallas_src>
import math
import functools

import jax
import jax.numpy as jnp
from jax.experimental import pallas as pl
from jax.experimental.pallas import tpu as pltpu

_LANE = 128      # lane width: feature dims padded to multiples of this
_SUBLANE = 8     # sublane width: batch tiles are multiples of this


def _round_up(n, m):
    return ((n + m - 1) // m) * m


def _mlp_fused_kernel(*refs, acts):
    """refs = (x_ref, w1, b1, ..., wn, bn, o_ref).

    h = x; for each layer i: h = act_i(h @ W_i + b_i); o = h.
    Matmul operands in bf16 (MXU), accumulate/bias/activation in f32.
    Intermediates stay in vregs/VMEM — never written to HBM.
    """
    x_ref, o_ref = refs[0], refs[-1]
    h = x_ref[...].astype(jnp.bfloat16)
    for i, act in enumerate(acts):
        w = refs[1 + 2 * i][...]                       # bf16 [in, out_pad]
        b = refs[2 + 2 * i][...]                       # f32  [1,  out_pad]
        h = jnp.dot(h, w, preferred_element_type=jnp.float32) + b
        if act == "relu":
            h = jnp.maximum(h, 0.0)
        elif act == "tanh":
            h = jnp.tanh(h)
        # act is None -> identity (matches SimpleMLP's "activation[no] is None")
        if i + 1 < len(acts):
            h = h.astype(jnp.bfloat16)                 # next MXU operand
    o_ref[...] = h.astype(o_ref.dtype)


def init_simple_mlp_params(key, dims_list):
    """nn.Linear default init (uniform +-1/sqrt(fan_in)).

    Weights are stored pre-transposed ([in, out] = PyTorch W^T), zero-padded
    ONCE to lane-dense (multiple-of-128) output widths, and cast to bf16
    (MXU operand dtype).  The FIRST layer keeps its raw input rows so x never
    needs lane padding; later layers consume the previous layer's padded
    width.  Biases are f32 [1, out_pad].  Zero padding is a mathematical
    no-op for the forward pass.
    """
    params = []
    for i in range(len(dims_list) - 1):
        fan_in, fan_out = dims_list[i], dims_list[i + 1]
        key, kw, kb = jax.random.split(key, 3)
        bound = 1.0 / math.sqrt(fan_in)
        w_t = jax.random.uniform(kw, (fan_in, fan_out), jnp.float32,
                                 minval=-bound, maxval=bound)
        b = jax.random.uniform(kb, (fan_out,), jnp.float32,
                               minval=-bound, maxval=bound)
        in_rows = fan_in if i == 0 else _round_up(fan_in, _LANE)
        out_pad = _round_up(fan_out, _LANE)
        w_pad = (jnp.zeros((in_rows, out_pad), jnp.float32)
                 .at[:fan_in, :fan_out].set(w_t)
                 .astype(jnp.bfloat16))
        b_pad = jnp.zeros((1, out_pad), jnp.float32).at[0, :fan_out].set(b)
        params.append((w_pad, b_pad))
    return params


@functools.partial(
    jax.jit, static_argnames=("out_dim", "tile_b", "single_buffer_weights"))
def _forward(x, params, *, out_dim, tile_b, single_buffer_weights):
    batch, in_dim = x.shape
    out_pad = params[-1][0].shape[1]
    n_layers = len(params)
    acts = tuple("tanh" if i == n_layers - 1 else "relu"
                 for i in range(n_layers))

    # ---- batch tiling: >=2 grid steps when possible (v7x has 2 TCs), big
    # tiles for big batches, and at most ~SUBLANE padded rows per step.
    b_pad = _round_up(max(batch, _SUBLANE), _SUBLANE)
    n_steps = max(pl.cdiv(b_pad, tile_b),
                  2 if b_pad >= 2 * _SUBLANE else 1)
    tb = _round_up(pl.cdiv(b_pad, n_steps), _SUBLANE)
    n_steps = pl.cdiv(b_pad, tb)
    b_pad = n_steps * tb
    if b_pad == batch:
        xp = x                                    # no copy at all
    else:
        xp = jnp.zeros((b_pad, in_dim), x.dtype).at[:batch].set(x)

    # Grid-invariant weights/biases: single pipeline buffer (no second copy).
    w_mode = dict(pipeline_mode=pl.Buffered(1)) if single_buffer_weights else {}

    in_specs = [pl.BlockSpec((tb, in_dim), lambda i: (i, 0))]
    flat_params = []
    for (w, b) in params:
        in_specs.append(pl.BlockSpec(w.shape, lambda i: (0, 0), **w_mode))
        in_specs.append(pl.BlockSpec(b.shape, lambda i: (0, 0), **w_mode))
        flat_params += [w, b]

    kernel = functools.partial(_mlp_fused_kernel, acts=acts)
    out_padded = pl.pallas_call(
        kernel,
        out_shape=jax.ShapeDtypeStruct((b_pad, out_pad), x.dtype),
        grid=(n_steps,),
        in_specs=in_specs,
        out_specs=pl.BlockSpec((tb, out_pad), lambda i: (i, 0)),
        compiler_params=pltpu.CompilerParams(
            dimension_semantics=("parallel",)),    # batch tiles shard over TCs
    )(xp, *flat_params)
    return out_padded[:batch, :out_dim]


def simple_mlp_forward(x, params, out_dim, *, tile_b=1024):
    """SimpleMLP forward (ReLU hidden layers, Tanh last) as one fused kernel."""
    try:
        return _forward(x, params, out_dim=out_dim, tile_b=tile_b,
                        single_buffer_weights=True)
    except Exception:
        # pl.Buffered(1) not supported by this jax/libtpu -> default (double-
        # buffered) specs; negligible VMEM cost at these sizes.
        return _forward(x, params, out_dim=out_dim, tile_b=tile_b,
                        single_buffer_weights=False)


def simple_mlp_reference_bf16(x, params, out_dim):
    """Pure-JAX reference with the exact same bf16-operand / f32-accumulate
    math the kernel uses (tight tolerance)."""
    h = x
    n = len(params)
    for i, (w, b) in enumerate(params):
        h = jnp.dot(h.astype(jnp.bfloat16), w,
                    preferred_element_type=jnp.float32) + b
        h = jnp.tanh(h) if i == n - 1 else jnp.maximum(h, 0.0)
    return h[:, :out_dim]


def simple_mlp_reference_f32(x, params, out_dim):
    """Full-f32 HIGHEST-precision reference (loose sanity check only,
    since the kernel deliberately uses bf16 MXU operands)."""
    h = x
    n = len(params)
    for i, (w, b) in enumerate(params):
        h = jnp.dot(h, w.astype(jnp.float32),
                    precision=jax.lax.Precision.HIGHEST) + b
        h = jnp.tanh(h) if i == n - 1 else jnp.maximum(h, 0.0)
    return h[:, :out_dim]


if __name__ == "__main__":
    key = jax.random.PRNGKey(0)
    dims_list = [16, 32, 32, 8]   # SimpleMLP([16, 32, 32, 8]) -> ReLU, ReLU, Tanh
    batch = 8

    key, kx, kp = jax.random.split(key, 3)
    x = jax.random.normal(kx, (batch, dims_list[0]), jnp.float32)
    params = init_simple_mlp_params(kp, dims_list)

    out = simple_mlp_forward(x, params, dims_list[-1])
    out = jax.block_until_ready(out)
    assert out.shape == (batch, dims_list[-1])

    ref_bf16 = simple_mlp_reference_bf16(x, params, dims_list[-1])
    assert jnp.allclose(out, ref_bf16, atol=1e-3, rtol=1e-3), \
        float(jnp.max(jnp.abs(out - ref_bf16)))

    ref_f32 = simple_mlp_reference_f32(x, params, dims_list[-1])
    assert jnp.allclose(out, ref_f32, atol=5e-2, rtol=5e-2), \
        float(jnp.max(jnp.abs(out - ref_f32)))

    print("KERNEL_OK")
</pallas_src>

<mosaic_0001>
module attributes {stable_mosaic.version = 11 : i64} {
  func.func @_mlp_fused_kernel(%arg0: i32, %arg1: memref<8x16xf32, #tpu.memory_space<vmem>>, %arg2: memref<16x128xbf16, #tpu.memory_space<vmem>>, %arg3: memref<1x128xf32, #tpu.memory_space<vmem>>, %arg4: memref<128x128xbf16, #tpu.memory_space<vmem>>, %arg5: memref<1x128xf32, #tpu.memory_space<vmem>>, %arg6: memref<128x128xbf16, #tpu.memory_space<vmem>>, %arg7: memref<1x128xf32, #tpu.memory_space<vmem>>, %arg8: memref<8x128xf32, #tpu.memory_space<vmem>>) attributes {dimension_semantics = [#tpu.dimension_semantics<parallel>], iteration_bounds = array<i64: 1>, scalar_prefetch = 0 : i64, scratch_operands = 0 : i64, tpu.core_type = #tpu.core_type<tc>, window_params = [{transform_indices = @transform_0, window_bounds = array<i64: 8, 16>}, {pipeline_mode = #tpu.pipeline_mode<synchronous>, transform_indices = @transform_1, window_bounds = array<i64: 16, 128>}, {pipeline_mode = #tpu.pipeline_mode<synchronous>, transform_indices = @transform_2, window_bounds = array<i64: 1, 128>}, {pipeline_mode = #tpu.pipeline_mode<synchronous>, transform_indices = @transform_3, window_bounds = array<i64: 128, 128>}, {pipeline_mode = #tpu.pipeline_mode<synchronous>, transform_indices = @transform_4, window_bounds = array<i64: 1, 128>}, {pipeline_mode = #tpu.pipeline_mode<synchronous>, transform_indices = @transform_5, window_bounds = array<i64: 128, 128>}, {pipeline_mode = #tpu.pipeline_mode<synchronous>, transform_indices = @transform_6, window_bounds = array<i64: 1, 128>}, {transform_indices = @transform_7, window_bounds = array<i64: 8, 128>}]} {
    %c0 = arith.constant 0 : index
    %c0_0 = arith.constant 0 : index
    %0 = vector.load %arg1[%c0, %c0_0] : memref<8x16xf32, #tpu.memory_space<vmem>>, vector<8x16xf32>
    %1 = arith.truncf %0 : vector<8x16xf32> to vector<8x16xbf16>
    %c0_1 = arith.constant 0 : index
    %c0_2 = arith.constant 0 : index
    %2 = vector.load %arg2[%c0_1, %c0_2] : memref<16x128xbf16, #tpu.memory_space<vmem>>, vector<16x128xbf16>
    %c0_3 = arith.constant 0 : index
    %c0_4 = arith.constant 0 : index
    %3 = vector.load %arg3[%c0_3, %c0_4] : memref<1x128xf32, #tpu.memory_space<vmem>>, vector<1x128xf32>
    %cst = arith.constant dense<0.000000e+00> : vector<8x128xf32>
    %4 = tpu.matmul %1, %2, %cst {dimension_numbers = #tpu.dot_dimension_numbers<[1], [0], [0], [1], [0, 0, 1, 1], [], []>} : vector<8x16xbf16>, vector<16x128xbf16>, vector<8x128xf32> -> vector<8x128xf32>
    %5 = vector.broadcast %3 : vector<1x128xf32> to vector<8x128xf32>
    %6 = arith.addf %4, %5 : vector<8x128xf32>
    %cst_5 = arith.constant 0.000000e+00 : f32
    %7 = vector.broadcast %cst_5 : f32 to vector<8x128xf32>
    %8 = arith.maximumf %6, %7 : vector<8x128xf32>
    %9 = arith.truncf %8 : vector<8x128xf32> to vector<8x128xbf16>
    %c0_6 = arith.constant 0 : index
    %c0_7 = arith.constant 0 : index
    %10 = vector.load %arg4[%c0_6, %c0_7] : memref<128x128xbf16, #tpu.memory_space<vmem>>, vector<128x128xbf16>
    %c0_8 = arith.constant 0 : index
    %c0_9 = arith.constant 0 : index
    %11 = vector.load %arg5[%c0_8, %c0_9] : memref<1x128xf32, #tpu.memory_space<vmem>>, vector<1x128xf32>
    %cst_10 = arith.constant dense<0.000000e+00> : vector<8x128xf32>
    %12 = tpu.matmul %9, %10, %cst_10 {dimension_numbers = #tpu.dot_dimension_numbers<[1], [0], [0], [1], [0, 0, 1, 1], [], []>} : vector<8x128xbf16>, vector<128x128xbf16>, vector<8x128xf32> -> vector<8x128xf32>
    %13 = vector.broadcast %11 : vector<1x128xf32> to vector<8x128xf32>
    %14 = arith.addf %12, %13 : vector<8x128xf32>
    %cst_11 = arith.constant 0.000000e+00 : f32
    %15 = vector.broadcast %cst_11 : f32 to vector<8x128xf32>
    %16 = arith.maximumf %14, %15 : vector<8x128xf32>
    %17 = arith.truncf %16 : vector<8x128xf32> to vector<8x128xbf16>
    %c0_12 = arith.constant 0 : index
    %c0_13 = arith.constant 0 : index
    %18 = vector.load %arg6[%c0_12, %c0_13] : memref<128x128xbf16, #tpu.memory_space<vmem>>, vector<128x128xbf16>
    %c0_14 = arith.constant 0 : index
    %c0_15 = arith.constant 0 : index
    %19 = vector.load %arg7[%c0_14, %c0_15] : memref<1x128xf32, #tpu.memory_space<vmem>>, vector<1x128xf32>
    %cst_16 = arith.constant dense<0.000000e+00> : vector<8x128xf32>
    %20 = tpu.matmul %17, %18, %cst_16 {dimension_numbers = #tpu.dot_dimension_numbers<[1], [0], [0], [1], [0, 0, 1, 1], [], []>} : vector<8x128xbf16>, vector<128x128xbf16>, vector<8x128xf32> -> vector<8x128xf32>
    %21 = vector.broadcast %19 : vector<1x128xf32> to vector<8x128xf32>
    %22 = arith.addf %20, %21 : vector<8x128xf32>
    %23 = math.tanh %22 : vector<8x128xf32>
    %c0_17 = arith.constant 0 : index
    %c0_18 = arith.constant 0 : index
    %24 = vector.load %arg8[%c0_17, %c0_18] : memref<8x128xf32, #tpu.memory_space<vmem>>, vector<8x128xf32>
    tpu.vector_store %arg8[%c0_17, %c0_18], %23 {strides = array<i32>} : memref<8x128xf32, #tpu.memory_space<vmem>>, vector<8x128xf32>,
    return
  }
  func.func @transform_0(%arg0: i32) -> (i32, i32) {
    %c0_i32 = arith.constant 0 : i32
    %c0_i32_0 = arith.constant 0 : i32
    return %arg0, %c0_i32 : i32, i32
  }
  func.func @transform_1(%arg0: i32) -> (i32, i32) {
    %c0_i32 = arith.constant 0 : i32
    %c0_i32_0 = arith.constant 0 : i32
    %c0_i32_1 = arith.constant 0 : i32
    return %c0_i32, %c0_i32_0 : i32, i32
  }
  func.func @transform_2(%arg0: i32) -> (i32, i32) {
    %c0_i32 = arith.constant 0 : i32
    %c0_i32_0 = arith.constant 0 : i32
    %c0_i32_1 = arith.constant 0 : i32
    return %c0_i32, %c0_i32_0 : i32, i32
  }
  func.func @transform_3(%arg0: i32) -> (i32, i32) {
    %c0_i32 = arith.constant 0 : i32
    %c0_i32_0 = arith.constant 0 : i32
    %c0_i32_1 = arith.constant 0 : i32
    return %c0_i32, %c0_i32_0 : i32, i32
  }
  func.func @transform_4(%arg0: i32) -> (i32, i32) {
    %c0_i32 = arith.constant 0 : i32
    %c0_i32_0 = arith.constant 0 : i32
    %c0_i32_1 = arith.constant 0 : i32
    return %c0_i32, %c0_i32_0 : i32, i32
  }
  func.func @transform_5(%arg0: i32) -> (i32, i32) {
    %c0_i32 = arith.constant 0 : i32
    %c0_i32_0 = arith.constant 0 : i32
    %c0_i32_1 = arith.constant 0 : i32
    return %c0_i32, %c0_i32_0 : i32, i32
  }
  func.func @transform_6(%arg0: i32) -> (i32, i32) {
    %c0_i32 = arith.constant 0 : i32
    %c0_i32_0 = arith.constant 0 : i32
    %c0_i32_1 = arith.constant 0 : i32
    return %c0_i32, %c0_i32_0 : i32, i32
  }
  func.func @transform_7(%arg0: i32) -> (i32, i32) {
    %c0_i32 = arith.constant 0 : i32
    %c0_i32_0 = arith.constant 0 : i32
    return %arg0, %c0_i32 : i32, i32
  }
}

module attributes {stable_mosaic.version = 11 : i64} {
  func.func @_mlp_fused_kernel(%arg0: i32, %arg1: memref<8x16xf32, #tpu.memory_space<vmem>>, %arg2: memref<16x128xbf16, #tpu.memory_space<vmem>>, %arg3: memref<1x128xf32, #tpu.memory_space<vmem>>, %arg4: memref<128x128xbf16, #tpu.memory_space<vmem>>, %arg5: memref<1x128xf32, #tpu.memory_space<vmem>>, %arg6: memref<128x128xbf16, #tpu.memory_space<vmem>>, %arg7: memref<1x128xf32, #tpu.memory_space<vmem>>, %arg8: memref<8x128xf32, #tpu.memory_space<vmem>>) attributes {dimension_semantics = [#tpu.dimension_semantics<parallel>], iteration_bounds = array<i64: 1>, scalar_prefetch = 0 : i64, scratch_operands = 0 : i64, tpu.core_type = #tpu.core_type<tc>, window_params = [{transform_indices = @transform_0, window_bounds = array<i64: 8, 16>}, {pipeline_mode = #tpu.pipeline_mode<synchronous>, transform_indices = @transform_1, window_bounds = array<i64: 16, 128>}, {pipeline_mode = #tpu.pipeline_mode<synchronous>, transform_indices = @transform_2, window_bounds = array<i64: 1, 128>}, {pipeline_mode = #tpu.pipeline_mode<synchronous>, transform_indices = @transform_3, window_bounds = array<i64: 128, 128>}, {pipeline_mode = #tpu.pipeline_mode<synchronous>, transform_indices = @transform_4, window_bounds = array<i64: 1, 128>}, {pipeline_mode = #tpu.pipeline_mode<synchronous>, transform_indices = @transform_5, window_bounds = array<i64: 128, 128>}, {pipeline_mode = #tpu.pipeline_mode<synchronous>, transform_indices = @transform_6, window_bounds = array<i64: 1, 128>}, {transform_indices = @transform_7, window_bounds = array<i64: 8, 128>}]} {
    %c0 = arith.constant 0 : index
    %c0_0 = arith.constant 0 : index
    %0 = vector.load %arg1[%c0, %c0_0] : memref<8x16xf32, #tpu.memory_space<vmem>>, vector<8x16xf32>
    %1 = arith.truncf %0 : vector<8x16xf32> to vector<8x16xbf16>
    %c0_1 = arith.constant 0 : index
    %c0_2 = arith.constant 0 : index
    %2 = vector.load %arg2[%c0_1, %c0_2] : memref<16x128xbf16, #tpu.memory_space<vmem>>, vector<16x128xbf16>
    %c0_3 = arith.constant 0 : index
    %c0_4 = arith.constant 0 : index
    %3 = vector.load %arg3[%c0_3, %c0_4] : memref<1x128xf32, #tpu.memory_space<vmem>>, vector<1x128xf32>
    %cst = arith.constant dense<0.000000e+00> : vector<8x128xf32>
    %4 = tpu.matmul %1, %2, %cst {dimension_numbers = #tpu.dot_dimension_numbers<[1], [0], [0], [1], [0, 0, 1, 1], [], []>} : vector<8x16xbf16>, vector<16x128xbf16>, vector<8x128xf32> -> vector<8x128xf32>
    %5 = vector.broadcast %3 : vector<1x128xf32> to vector<8x128xf32>
    %6 = arith.addf %4, %5 : vector<8x128xf32>
    %cst_5 = arith.constant 0.000000e+00 : f32
    %7 = vector.broadcast %cst_5 : f32 to vector<8x128xf32>
    %8 = arith.maximumf %6, %7 : vector<8x128xf32>
    %9 = arith.truncf %8 : vector<8x128xf32> to vector<8x128xbf16>
    %c0_6 = arith.constant 0 : index
    %c0_7 = arith.constant 0 : index
    %10 = vector.load %arg4[%c0_6, %c0_7] : memref<128x128xbf16, #tpu.memory_space<vmem>>, vector<128x128xbf16>
    %c0_8 = arith.constant 0 : index
    %c0_9 = arith.constant 0 : index
    %11 = vector.load %arg5[%c0_8, %c0_9] : memref<1x128xf32, #tpu.memory_space<vmem>>, vector<1x128xf32>
    %cst_10 = arith.constant dense<0.000000e+00> : vector<8x128xf32>
    %12 = tpu.matmul %9, %10, %cst_10 {dimension_numbers = #tpu.dot_dimension_numbers<[1], [0], [0], [1], [0, 0, 1, 1], [], []>} : vector<8x128xbf16>, vector<128x128xbf16>, vector<8x128xf32> -> vector<8x128xf32>
    %13 = vector.broadcast %11 : vector<1x128xf32> to vector<8x128xf32>
    %14 = arith.addf %12, %13 : vector<8x128xf32>
    %cst_11 = arith.constant 0.000000e+00 : f32
    %15 = vector.broadcast %cst_11 : f32 to vector<8x128xf32>
    %16 = arith.maximumf %14, %15 : vector<8x128xf32>
    %17 = arith.truncf %16 : vector<8x128xf32> to vector<8x128xbf16>
    %c0_12 = arith.constant 0 : index
    %c0_13 = arith.constant 0 : index
    %18 = vector.load %arg6[%c0_12, %c0_13] : memref<128x128xbf16, #tpu.memory_space<vmem>>, vector<128x128xbf16>
    %c0_14 = arith.constant 0 : index
    %c0_15 = arith.constant 0 : index
    %19 = vector.load %arg7[%c0_14, %c0_15] : memref<1x128xf32, #tpu.memory_space<vmem>>, vector<1x128xf32>
    %cst_16 = arith.constant dense<0.000000e+00> : vector<8x128xf32>
    %20 = tpu.matmul %17, %18, %cst_16 {dimension_numbers = #tpu.dot_dimension_numbers<[1], [0], [0], [1], [0, 0, 1, 1], [], []>} : vector<8x128xbf16>, vector<128x128xbf16>, vector<8x128xf32> -> vector<8x128xf32>
    %21 = vector.broadcast %19 : vector<1x128xf32> to vector<8x128xf32>
    %22 = arith.addf %20, %21 : vector<8x128xf32>
    %23 = math.tanh %22 : vector<8x128xf32>
    %c0_17 = arith.constant 0 : index
    %c0_18 = arith.constant 0 : index
    %24 = vector.load %arg8[%c0_17, %c0_18] : memref<8x128xf32, #tpu.memory_space<vmem>>, vector<8x128xf32>
    tpu.vector_store %arg8[%c0_17, %c0_18], %23 {strides = array<i32>} : memref<8x128xf32, #tpu.memory_space<vmem>>, vector<8x128xf32>,
    return
  }
  func.func @transform_0(%arg0: i32) -> (i32, i32) {
    %c0_i32 = arith.constant 0 : i32
    %c0_i32_0 = arith.constant 0 : i32
    return %arg0, %c0_i32 : i32, i32
  }
  func.func @transform_1(%arg0: i32) -> (i32, i32) {
    %c0_i32 = arith.constant 0 : i32
    %c0_i32_0 = arith.constant 0 : i32
    %c0_i32_1 = arith.constant 0 : i32
    return %c0_i32, %c0_i32_0 : i32, i32
  }
  func.func @transform_2(%arg0: i32) -> (i32, i32) {
    %c0_i32 = arith.constant 0 : i32
    %c0_i32_0 = arith.constant 0 : i32
    %c0_i32_1 = arith.constant 0 : i32
    return %c0_i32, %c0_i32_0 : i32, i32
  }
  func.func @transform_3(%arg0: i32) -> (i32, i32) {
    %c0_i32 = arith.constant 0 : i32
    %c0_i32_0 = arith.constant 0 : i32
    %c0_i32_1 = arith.constant 0 : i32
    return %c0_i32, %c0_i32_0 : i32, i32
  }
  func.func @transform_4(%arg0: i32) -> (i32, i32) {
    %c0_i32 = arith.constant 0 : i32
    %c0_i32_0 = arith.constant 0 : i32
    %c0_i32_1 = arith.constant 0 : i32
    return %c0_i32, %c0_i32_0 : i32, i32
  }
  func.func @transform_5(%arg0: i32) -> (i32, i32) {
    %c0_i32 = arith.constant 0 : i32
    %c0_i32_0 = arith.constant 0 : i32
    %c0_i32_1 = arith.constant 0 : i32
    return %c0_i32, %c0_i32_0 : i32, i32
  }
  func.func @transform_6(%arg0: i32) -> (i32, i32) {
    %c0_i32 = arith.constant 0 : i32
    %c0_i32_0 = arith.constant 0 : i32
    %c0_i32_1 = arith.constant 0 : i32
    return %c0_i32, %c0_i32_0 : i32, i32
  }
  func.func @transform_7(%arg0: i32) -> (i32, i32) {
    %c0_i32 = arith.constant 0 : i32
    %c0_i32_0 = arith.constant 0 : i32
    return %arg0, %c0_i32 : i32, i32
  }
}

</mosaic_0001>

<bundles_post_ra>
// kernel: _forward.1
= control target key start
LH: loop header
LB: loop body
LE: loop exit
PB: predicated region body
PF: predicated region fallthrough
CT: control target
= control target key end

     0   :  { %12 = vsyncpa [#allocation3], 0  ;;  %s767_s0 = inlined_call_operand.hbm [shape: f32[8,16], index: 0, kind: input, shape index: {}]   ;;  %s768_s1 = inlined_call_operand.hbm [shape: bf16[16,128], index: 1, kind: input, shape index: {}]   ;;  %s769_s2 = inlined_call_operand.vmem [shape: f32[1,128], index: 2, kind: input, shape index: {}]   ;;  %s770_s3 = inlined_call_operand.hbm [shape: bf16[128,128], index: 3, kind: input, shape index: {}]   ;;  %s771_s4 = inlined_call_operand.vmem [shape: f32[1,128], index: 4, kind: input, shape index: {}]   ;;  %s772_s5 = inlined_call_operand.hbm [shape: bf16[128,128], index: 5, kind: input, shape index: {}]   ;;  %s773_s6 = inlined_call_operand.vmem [shape: f32[1,128], index: 6, kind: input, shape index: {}]   ;;  %s774_s7 = inlined_call_operand.hbm [shape: f32[8,128], index: 7, kind: output, shape index: {}]  }
   0x1   :  { %13 = vsyncpa [#allocation6], 0 }
   0x2   :  { %14 = vsyncpa [#allocation9], 0 }
   0x3   :  { %15 = vsyncpa [#allocation4], 0  ;;  %s620_s24 = smov [#allocation5]   ;;  %s502_s28 = scalar_lea.hbm %s768_s1, 128 }
   0x4   :  { %s31_s25 = sshll.u32 %s620_s24, 4  ;;  %p503_p0 = scmp.ne.s32.totalorder %s768_s1, %s502_s28  ;;  %s32_s25 = int_to_ptr.vmem [resolvable:$true] %s31_s25 }
   0x5   :  { %p506_p1 = scmp.lt.u32.totalorder %s502_s28, %s768_s1 }
   0x7   :  { %p508_p2 = pnand %p506_p1, %p503_p0 }
   0x9   :  { %511 = shalt.err (!%p508_p2)
}
   0xa   :  { %s512_s10 = scalar_lea.vmem %s32_s25, 128  ;;  %p517_p4 = scmp.lt.s32.totalorder %s32_s25, %s32_s25 }
   0xb   :  { %p513_p3 = scmp.ne.s32.totalorder %s32_s25, %s512_s10  ;;  %p518_p5 = scmp.lt.s32.totalorder %s512_s10, %s512_s10 }
   0xd   :  { %p519_p6 = por %p518_p5, %p517_p4 }
   0xf   :  { %p520_p7 = pnand %p519_p6, %p513_p3 }
  0x11   :  { %523 = shalt.err (!%p520_p7)
}
  0x12   :  { %s621_s11 = smov 64   ;;  %s622_s12 = smov 4  }
  0x13   :  { %37 = dma.hbm_to_vmem [thread:$0]  %s768_s1, 128, %s32_s25, [#allocation6], %s621_s11, %s621_s11, %s622_s12  }
  0x14   :  { %s623_s15 = smov [#allocation2]   ;;  %s624_s17 = smov [#allocation7]  }
  0x15   :  { %s22_s16 = sshll.u32 %s623_s15, 4  ;;  %s45_s18 = sshll.u32 %s624_s17, 4  ;;  %s23_s16 = int_to_ptr.vmem [resolvable:$true] %s22_s16  ;;  %s46_s18 = int_to_ptr.vmem [resolvable:$true] %s45_s18 }
  0x16   :  { %s524_s21 = scalar_lea.hbm %s767_s0, 128 }
  0x17   :  { %p525_p8 = scmp.ne.s32.totalorder %s767_s0, %s524_s21  ;;  %p528_p9 = scmp.lt.u32.totalorder %s524_s21, %s767_s0 }
  0x19   :  { %p530_p10 = pnand %p528_p9, %p525_p8 }
  0x1b   :  { %533 = shalt.err (!%p530_p10)
}
  0x1c   :  { %s534_s1 = scalar_lea.vmem %s23_s16, 128  ;;  %p539_p12 = scmp.lt.s32.totalorder %s23_s16, %s23_s16 }
  0x1d   :  { %p535_p11 = scmp.ne.s32.totalorder %s23_s16, %s534_s1  ;;  %p540_p13 = scmp.lt.s32.totalorder %s534_s1, %s534_s1 }
  0x1f   :  { %p541_p0 = por %p540_p13, %p539_p12 }
  0x21   :  { %p542_p1 = pnand %p541_p0, %p535_p11 }
  0x23   :  { %545 = shalt.err (!%p542_p1)
}
  0x24   :  { %25 = dma.hbm_to_vmem [thread:$0]  %s767_s0, 128, %s23_s16, [#allocation3]  }
  0x25   :  { %s546_s30 = scalar_lea.hbm %s770_s3, 1024 }
  0x26   :  { %p547_p2 = scmp.ne.s32.totalorder %s770_s3, %s546_s30  ;;  %p550_p3 = scmp.lt.u32.totalorder %s546_s30, %s770_s3 }
  0x28   :  { %p552_p4 = pnand %p550_p3, %p547_p2 }
  0x2a   :  { %555 = shalt.err (!%p552_p4)
}
  0x2b   :  { %s556_s14 = scalar_lea.vmem %s46_s18, 1024  ;;  %p561_p6 = scmp.lt.s32.totalorder %s46_s18, %s46_s18 }
  0x2c   :  { %p557_p5 = scmp.ne.s32.totalorder %s46_s18, %s556_s14  ;;  %p562_p7 = scmp.lt.s32.totalorder %s556_s14, %s556_s14 }
  0x2e   :  { %p563_p8 = por %p562_p7, %p561_p6 }
  0x30   :  { %p564_p9 = pnand %p563_p8, %p557_p5 }
  0x32   :  { %567 = shalt.err (!%p564_p9)
}
  0x33   :  { %51 = dma.hbm_to_vmem [thread:$0]  %s770_s3, 1024, %s46_s18, [#allocation6], %s621_s11, %s621_s11, %s622_s12  }
  0x34   :  { %s625_s16 = smov [#allocation8]   ;;  %s568_s21 = scalar_lea.hbm %s772_s5, 1024 }
  0x35   :  { %s59_s17 = sshll.u32 %s625_s16, 4  ;;  %p569_p10 = scmp.ne.s32.totalorder %s772_s5, %s568_s21  ;;  %s60_s17 = int_to_ptr.vmem [resolvable:$true] %s59_s17 }
  0x36   :  { %p572_p11 = scmp.lt.u32.totalorder %s568_s21, %s772_s5 }
  0x38   :  { %p574_p12 = pnand %p572_p11, %p569_p10 }
  0x3a   :  { %577 = shalt.err (!%p574_p12)
}
  0x3b   :  { %s578_s1 = scalar_lea.vmem %s60_s17, 1024  ;;  %p583_p0 = scmp.lt.s32.totalorder %s60_s17, %s60_s17 }
  0x3c   :  { %p579_p13 = scmp.ne.s32.totalorder %s60_s17, %s578_s1  ;;  %p584_p1 = scmp.lt.s32.totalorder %s578_s1, %s578_s1 }
  0x3e   :  { %p585_p2 = por %p584_p1, %p583_p0 }
  0x40   :  { %p586_p3 = pnand %p585_p2, %p579_p13 }
  0x42   :  { %589 = shalt.err (!%p586_p3)
}
  0x43   :  { %65 = dma.hbm_to_vmem [thread:$0]  %s772_s5, 1024, %s60_s17, [#allocation9], %s621_s11, %s621_s11, %s622_s12  }
  0x44   :  { %612 = dma.done.wait [#allocation3], 128  }
  0x45   :  { %613 = vsyncadd [#allocation3], 4294967168 }
  0x46   :  { %614 = dma.done.wait [#allocation6], 1152  }
  0x47   :  { %615 = vsyncadd [#allocation6], 4294966144 }
  0x48   :  { %616 = dma.done.wait [#allocation9], 1024  }
  0x49   :  { %617 = vsyncadd [#allocation9], 4294966272  ;;  %v626_v0 = vmov 0.0   ;;  %vm627_vm0 = vmmov 0   ;;  %v483_v1 = vld [vmem:[#allocation5] sm:$0xff]   ;;  %v81_v2 = vld [vmem:[#allocation2] sm:$0xff] }
  0x4a   :  { %428 = vmatprep.subr.bf16.mxu0 %v626_v0  ;;  %430 = vmatprep.mubr.msk.bf16.mxu0 %vm627_vm0, %v626_v0  ;;  %v82_v3 = vpack.c.bf16 %v81_v2, %v81_v2  ;;  %vm98_vm1 = vcmask 130048   ;;  %v484_v4 = vld [vmem:[#allocation7] sm:$0xff]   ;;  %v485_v5 = vld [vmem:[#allocation7 + $0x8] sm:$0xff]   ;;  %v486_v6 = vld [vmem:[#allocation7 + $0x10] sm:$0xff]   ;;  %s628_s28 = smov [#allocation10]  }
  0x4b   :  { %434 = vmatprep.subr.bf16.mxu1 %v626_v0  ;;  %450 = vmatprep.mubr.msk.bf16.mxu1 %vm627_vm0, %v626_v0  ;;  %v487_v7 = vld [vmem:[#allocation7 + $0x18] sm:$0xff]   ;;  %v488_v8 = vld [vmem:[#allocation7 + $0x20] sm:$0xff]   ;;  %v489_v9 = vld [vmem:[#allocation7 + $0x28] sm:$0xff]  }
  0x4c   :  { %429 = vmatpush3.bf16.msra.mxu0 %v483_v1  ;;  %435 = vmatpush3.bf16.msra.mxu1 %v484_v4  ;;  %v490_v10 = vld [vmem:[#allocation7 + $0x30] sm:$0xff]   ;;  %v491_v11 = vld [vmem:[#allocation7 + $0x38] sm:$0xff]   ;;  %v492_v12 = vld [vmem:[#allocation8] sm:$0xff]  }
  0x4d   :  { %454 = vmatprep.subr.bf16.mxu0 %v626_v0  ;;  %436 = vmatprep.subr.bf16.mxu1 %v626_v0  ;;  %v493_v13 = vld [vmem:[#allocation8 + $0x8] sm:$0xff]   ;;  %v494_v14 = vld [vmem:[#allocation8 + $0x10] sm:$0xff]   ;;  %v495_v15 = vld [vmem:[#allocation8 + $0x18] sm:$0xff]  }
  0x4e   :  { %v496_v16 = vld [vmem:[#allocation8 + $0x20] sm:$0xff]   ;;  %v497_v17 = vld [vmem:[#allocation8 + $0x28] sm:$0xff]   ;;  %v387_v18 = vld [vmem:[%s769_s2] ss:$0 sm:$0xff] }
  0x4f   :  { %431 = vmatmul.mubr.msk.bf16.vlgmr.msra.gmra.mrb[0].mxu0 %vm98_vm1, %v82_v3  ;;  %v498_v26 = vld [vmem:[#allocation8 + $0x30] sm:$0xff]   ;;  %v499_v27 = vld [vmem:[#allocation8 + $0x38] sm:$0xff]  }
  0x50   :  { %470 = vmatprep.mubr.msk.bf16.mxu0 %vm627_vm0, %v626_v0  ;;  %437 = vmatpush3.bf16.msra.mxu1 %v485_v5  ;;  %v390_v28 = vld [vmem:[%s771_s4] ss:$0 sm:$0xff]  ;;  %s376_s4 = sshll.u32 %s628_s28, 4  ;;  %s377_s4 = int_to_ptr.vmem [resolvable:$true] %s376_s4 }
  0x51   :  { %438 = vmatprep.subr.bf16.mxu1 %v626_v0  ;;  %455 = vmatpush3.bf16.msra.mxu0 %v492_v12  ;;  %v399_v36 = vld [vmem:[%s773_s6] ss:$0 sm:$0xff]  ;;  %s590_s29 = scalar_lea.vmem %s377_s4, 128  ;;  %p595_p5 = scmp.lt.s32.totalorder %s377_s4, %s377_s4 }
  0x52   :  { %456 = vmatprep.subr.bf16.mxu0 %v626_v0  ;;  %p591_p4 = scmp.ne.s32.totalorder %s377_s4, %s590_s29  ;;  %p596_p6 = scmp.lt.s32.totalorder %s590_s29, %s590_s29 }
  0x54   :  { %439 = vmatpush3.bf16.msra.mxu1 %v486_v6  ;;  %p597_p7 = por %p596_p6, %p595_p5 }
  0x55   :  { %440 = vmatprep.subr.bf16.mxu1 %v626_v0  ;;  %457 = vmatpush3.bf16.msra.mxu0 %v493_v13 }
  0x56   :  { %458 = vmatprep.subr.bf16.mxu0 %v626_v0  ;;  %p598_p8 = pnand %p597_p7, %p591_p4 }
  0x58   :  { %441 = vmatpush3.bf16.msra.mxu1 %v487_v7 }
  0x59   :  { %442 = vmatprep.subr.bf16.mxu1 %v626_v0  ;;  %459 = vmatpush3.bf16.msra.mxu0 %v494_v14 }
  0x5a   :  { %460 = vmatprep.subr.bf16.mxu0 %v626_v0 }
  0x5c   :  { %443 = vmatpush3.bf16.msra.mxu1 %v488_v8 }
  0x5d   :  { %444 = vmatprep.subr.bf16.mxu1 %v626_v0  ;;  %461 = vmatpush3.bf16.msra.mxu0 %v495_v15 }
  0x5e   :  { %462 = vmatprep.subr.bf16.mxu0 %v626_v0 }
  0x60   :  { %445 = vmatpush3.bf16.msra.mxu1 %v489_v9 }
  0x61   :  { %446 = vmatprep.subr.bf16.mxu1 %v626_v0  ;;  %463 = vmatpush3.bf16.msra.mxu0 %v496_v16 }
  0x62   :  { %464 = vmatprep.subr.bf16.mxu0 %v626_v0 }
  0x64   :  { %447 = vmatpush3.bf16.msra.mxu1 %v490_v10 }
  0x65   :  { %448 = vmatprep.subr.bf16.mxu1 %v626_v0  ;;  %465 = vmatpush3.bf16.msra.mxu0 %v497_v17 }
  0x66   :  { %466 = vmatprep.subr.bf16.mxu0 %v626_v0 }
  0x68   :  { %449 = vmatpush3.bf16.msra.mxu1 %v491_v11 }
  0x69   :  { %467 = vmatpush3.bf16.msra.mxu0 %v498_v26 }
  0x6a   :  { %468 = vmatprep.subr.bf16.mxu0 %v626_v0 }
  0x6d   :  { %469 = vmatpush3.bf16.msra.mxu0 %v499_v27 }
 0x122   :  { %v136_v19 = vpop.f32.mrb[0].mxu0 }
 0x123   :  { %v137_v20 = vadd.f32 %v387_v18, %v136_v19  ;;  %v432_v21 = vpop.f32.mrb[1].mxu0 }
 0x124   :  { %v139_v22 = vpop.f32.mrb[2].mxu0 }
 0x125   :  { %v142_v23 = vmax.f32 %v137_v20, 0.0  ;;  %v433_v24 = vpop.f32.mrb[3].mxu0 }
 0x127   :  { %v143_v25 = vpack.c.bf16 %v142_v23, %v142_v23 }
 0x129   :  { %451 = vmatmul.mubr.bf16.vlgmr.msra.gmra.mrb[0].mxu1 %v143_v25 }
 0x1fc   :  { %v249_v29 = vpop.f32.mrb[0].mxu1 }
 0x1fd   :  { %v250_v30 = vadd.f32 %v390_v28, %v249_v29  ;;  %v452_v31 = vpop.f32.mrb[1].mxu1 }
 0x1fe   :  { %v252_v32 = vpop.f32.mrb[2].mxu1 }
 0x1ff   :  { %v255_v33 = vmax.f32 %v250_v30, 0.0  ;;  %v453_v34 = vpop.f32.mrb[3].mxu1 }
 0x201   :  { %v256_v35 = vpack.c.bf16 %v255_v33, %v255_v33 }
 0x203   :  { %471 = vmatmul.mubr.bf16.vlgmr.msra.gmra.mrb[4].mxu0 %v256_v35 }
 0x2d6   :  { %v362_v37 = vpop.f32.mrb[4].mxu0 }
 0x2d7   :  { %v363_v38 = vadd.f32 %v399_v36, %v362_v37  ;;  %v472_v39 = vpop.f32.mrb[5].mxu0 }
 0x2d8   :  { %v365_v40 = vpop.f32.mrb[6].mxu0 }
 0x2d9   :  { %500 = vtanh.f32 %v363_v38  ;;  %v473_v41 = vpop.f32.mrb[7].mxu0 }
 0x2e3   :  { %v501_v42 = vpop.eup %500 }
 0x2e4   :  { %369 = vst [vmem:[#allocation10] sm:$0xff] %v501_v42 }
 0x2e5   :  { %601 = shalt.err (!%p598_p8)
}
 0x2e6   :  { %s602_s8 = scalar_lea.hbm %s774_s7, 128 }
 0x2e7   :  { %p603_p9 = scmp.ne.s32.totalorder %s774_s7, %s602_s8  ;;  %p606_p10 = scmp.lt.u32.totalorder %s602_s8, %s774_s7 }
 0x2e9   :  { %p608_p11 = pnand %p606_p10, %p603_p9 }
 0x2eb   :  { %611 = shalt.err (!%p608_p11)
}
 0x2ec   :  { %379 = dma.vmem_to_hbm [thread:$0]  %s377_s4, 128, %s774_s7, [#allocation4]  }
 0x2ed   :  { %618 = dma.done.wait [#allocation4], 128  }
 0x2ee   :  { %619 = vsyncadd [#allocation4], 4294967168 }
 0x2ef   :  { %383 = vsyncpa [#allocation3], 1 }
 0x2f0   :  { %384 = vsyncpa [#allocation6], 1 }
 0x2f1   :  { %385 = vsyncpa [#allocation9], 1 }
 0x2f2   :  { %386 = vsyncpa [#allocation4], 1 }

// kernel: _forward.1
= control target key start
LH: loop header
LB: loop body
LE: loop exit
PB: predicated region body
PF: predicated region fallthrough
CT: control target
= control target key end

     0   :  { %12 = vsyncpa [#allocation3], 0  ;;  %s767_s0 = inlined_call_operand.hbm [shape: f32[8,16], index: 0, kind: input, shape index: {}]   ;;  %s768_s1 = inlined_call_operand.hbm [shape: bf16[16,128], index: 1, kind: input, shape index: {}]   ;;  %s769_s2 = inlined_call_operand.vmem [shape: f32[1,128], index: 2, kind: input, shape index: {}]   ;;  %s770_s3 = inlined_call_operand.hbm [shape: bf16[128,128], index: 3, kind: input, shape index: {}]   ;;  %s771_s4 = inlined_call_operand.vmem [shape: f32[1,128], index: 4, kind: input, shape index: {}]   ;;  %s772_s5 = inlined_call_operand.hbm [shape: bf16[128,128], index: 5, kind: input, shape index: {}]   ;;  %s773_s6 = inlined_call_operand.vmem [shape: f32[1,128], index: 6, kind: input, shape index: {}]   ;;  %s774_s7 = inlined_call_operand.hbm [shape: f32[8,128], index: 7, kind: output, shape index: {}]  }
   0x1   :  { %13 = vsyncpa [#allocation6], 0 }
   0x2   :  { %14 = vsyncpa [#allocation9], 0 }
   0x3   :  { %15 = vsyncpa [#allocation4], 0  ;;  %s620_s24 = smov [#allocation5]   ;;  %s502_s28 = scalar_lea.hbm %s768_s1, 128 }
   0x4   :  { %s31_s25 = sshll.u32 %s620_s24, 4  ;;  %p503_p0 = scmp.ne.s32.totalorder %s768_s1, %s502_s28  ;;  %s32_s25 = int_to_ptr.vmem [resolvable:$true] %s31_s25 }
   0x5   :  { %p506_p1 = scmp.lt.u32.totalorder %s502_s28, %s768_s1 }
   0x7   :  { %p508_p2 = pnand %p506_p1, %p503_p0 }
   0x9   :  { %511 = shalt.err (!%p508_p2)
}
   0xa   :  { %s512_s10 = scalar_lea.vmem %s32_s25, 128  ;;  %p517_p4 = scmp.lt.s32.totalorder %s32_s25, %s32_s25 }
   0xb   :  { %p513_p3 = scmp.ne.s32.totalorder %s32_s25, %s512_s10  ;;  %p518_p5 = scmp.lt.s32.totalorder %s512_s10, %s512_s10 }
   0xd   :  { %p519_p6 = por %p518_p5, %p517_p4 }
   0xf   :  { %p520_p7 = pnand %p519_p6, %p513_p3 }
  0x11   :  { %523 = shalt.err (!%p520_p7)
}
  0x12   :  { %s621_s11 = smov 64   ;;  %s622_s12 = smov 4  }
  0x13   :  { %37 = dma.hbm_to_vmem [thread:$0]  %s768_s1, 128, %s32_s25, [#allocation6], %s621_s11, %s621_s11, %s622_s12  }
  0x14   :  { %s623_s15 = smov [#allocation2]   ;;  %s624_s17 = smov [#allocation7]  }
  0x15   :  { %s22_s16 = sshll.u32 %s623_s15, 4  ;;  %s45_s18 = sshll.u32 %s624_s17, 4  ;;  %s23_s16 = int_to_ptr.vmem [resolvable:$true] %s22_s16  ;;  %s46_s18 = int_to_ptr.vmem [resolvable:$true] %s45_s18 }
  0x16   :  { %s524_s21 = scalar_lea.hbm %s767_s0, 128 }
  0x17   :  { %p525_p8 = scmp.ne.s32.totalorder %s767_s0, %s524_s21  ;;  %p528_p9 = scmp.lt.u32.totalorder %s524_s21, %s767_s0 }
  0x19   :  { %p530_p10 = pnand %p528_p9, %p525_p8 }
  0x1b   :  { %533 = shalt.err (!%p530_p10)
}
  0x1c   :  { %s534_s1 = scalar_lea.vmem %s23_s16, 128  ;;  %p539_p12 = scmp.lt.s32.totalorder %s23_s16, %s23_s16 }
  0x1d   :  { %p535_p11 = scmp.ne.s32.totalorder %s23_s16, %s534_s1  ;;  %p540_p13 = scmp.lt.s32.totalorder %s534_s1, %s534_s1 }
  0x1f   :  { %p541_p0 = por %p540_p13, %p539_p12 }
  0x21   :  { %p542_p1 = pnand %p541_p0, %p535_p11 }
  0x23   :  { %545 = shalt.err (!%p542_p1)
}
  0x24   :  { %25 = dma.hbm_to_vmem [thread:$0]  %s767_s0, 128, %s23_s16, [#allocation3]  }
  0x25   :  { %s546_s30 = scalar_lea.hbm %s770_s3, 1024 }
  0x26   :  { %p547_p2 = scmp.ne.s32.totalorder %s770_s3, %s546_s30  ;;  %p550_p3 = scmp.lt.u32.totalorder %s546_s30, %s770_s3 }
  0x28   :  { %p552_p4 = pnand %p550_p3, %p547_p2 }
  0x2a   :  { %555 = shalt.err (!%p552_p4)
}
  0x2b   :  { %s556_s14 = scalar_lea.vmem %s46_s18, 1024  ;;  %p561_p6 = scmp.lt.s32.totalorder %s46_s18, %s46_s18 }
  0x2c   :  { %p557_p5 = scmp.ne.s32.totalorder %s46_s18, %s556_s14  ;;  %p562_p7 = scmp.lt.s32.totalorder %s556_s14, %s556_s14 }
  0x2e   :  { %p563_p8 = por %p562_p7, %p561_p6 }
  0x30   :  { %p564_p9 = pnand %p563_p8, %p557_p5 }
  0x32   :  { %567 = shalt.err (!%p564_p9)
}
  0x33   :  { %51 = dma.hbm_to_vmem [thread:$0]  %s770_s3, 1024, %s46_s18, [#allocation6], %s621_s11, %s621_s11, %s622_s12  }
  0x34   :  { %s625_s16 = smov [#allocation8]   ;;  %s568_s21 = scalar_lea.hbm %s772_s5, 1024 }
  0x35   :  { %s59_s17 = sshll.u32 %s625_s16, 4  ;;  %p569_p10 = scmp.ne.s32.totalorder %s772_s5, %s568_s21  ;;  %s60_s17 = int_to_ptr.vmem [resolvable:$true] %s59_s17 }
  0x36   :  { %p572_p11 = scmp.lt.u32.totalorder %s568_s21, %s772_s5 }
  0x38   :  { %p574_p12 = pnand %p572_p11, %p569_p10 }
  0x3a   :  { %577 = shalt.err (!%p574_p12)
}
  0x3b   :  { %s578_s1 = scalar_lea.vmem %s60_s17, 1024  ;;  %p583_p0 = scmp.lt.s32.totalorder %s60_s17, %s60_s17 }
  0x3c   :  { %p579_p13 = scmp.ne.s32.totalorder %s60_s17, %s578_s1  ;;  %p584_p1 = scmp.lt.s32.totalorder %s578_s1, %s578_s1 }
  0x3e   :  { %p585_p2 = por %p584_p1, %p583_p0 }
  0x40   :  { %p586_p3 = pnand %p585_p2, %p579_p13 }
  0x42   :  { %589 = shalt.err (!%p586_p3)
}
  0x43   :  { %65 = dma.hbm_to_vmem [thread:$0]  %s772_s5, 1024, %s60_s17, [#allocation9], %s621_s11, %s621_s11, %s622_s12  }
  0x44   :  { %612 = dma.done.wait [#allocation3], 128  }
  0x45   :  { %613 = vsyncadd [#allocation3], 4294967168 }
  0x46   :  { %614 = dma.done.wait [#allocation6], 1152  }
  0x47   :  { %615 = vsyncadd [#allocation6], 4294966144 }
  0x48   :  { %616 = dma.done.wait [#allocation9], 1024  }
  0x49   :  { %617 = vsyncadd [#allocation9], 4294966272  ;;  %v626_v0 = vmov 0.0   ;;  %vm627_vm0 = vmmov 0   ;;  %v483_v1 = vld [vmem:[#allocation5] sm:$0xff]   ;;  %v81_v2 = vld [vmem:[#allocation2] sm:$0xff] }
  0x4a   :  { %428 = vmatprep.subr.bf16.mxu0 %v626_v0  ;;  %430 = vmatprep.mubr.msk.bf16.mxu0 %vm627_vm0, %v626_v0  ;;  %v82_v3 = vpack.c.bf16 %v81_v2, %v81_v2  ;;  %vm98_vm1 = vcmask 130048   ;;  %v484_v4 = vld [vmem:[#allocation7] sm:$0xff]   ;;  %v485_v5 = vld [vmem:[#allocation7 + $0x8] sm:$0xff]   ;;  %v486_v6 = vld [vmem:[#allocation7 + $0x10] sm:$0xff]   ;;  %s628_s28 = smov [#allocation10]  }
  0x4b   :  { %434 = vmatprep.subr.bf16.mxu1 %v626_v0  ;;  %450 = vmatprep.mubr.msk.bf16.mxu1 %vm627_vm0, %v626_v0  ;;  %v487_v7 = vld [vmem:[#allocation7 + $0x18] sm:$0xff]   ;;  %v488_v8 = vld [vmem:[#allocation7 + $0x20] sm:$0xff]   ;;  %v489_v9 = vld [vmem:[#allocation7 + $0x28] sm:$0xff]  }
  0x4c   :  { %429 = vmatpush3.bf16.msra.mxu0 %v483_v1  ;;  %435 = vmatpush3.bf16.msra.mxu1 %v484_v4  ;;  %v490_v10 = vld [vmem:[#allocation7 + $0x30] sm:$0xff]   ;;  %v491_v11 = vld [vmem:[#allocation7 + $0x38] sm:$0xff]   ;;  %v492_v12 = vld [vmem:[#allocation8] sm:$0xff]  }
  0x4d   :  { %454 = vmatprep.subr.bf16.mxu0 %v626_v0  ;;  %436 = vmatprep.subr.bf16.mxu1 %v626_v0  ;;  %v493_v13 = vld [vmem:[#allocation8 + $0x8] sm:$0xff]   ;;  %v494_v14 = vld [vmem:[#allocation8 + $0x10] sm:$0xff]   ;;  %v495_v15 = vld [vmem:[#allocation8 + $0x18] sm:$0xff]  }
  0x4e   :  { %v496_v16 = vld [vmem:[#allocation8 + $0x20] sm:$0xff]   ;;  %v497_v17 = vld [vmem:[#allocation8 + $0x28] sm:$0xff]   ;;  %v387_v18 = vld [vmem:[%s769_s2] ss:$0 sm:$0xff] }
  0x4f   :  { %431 = vmatmul.mubr.msk.bf16.vlgmr.msra.gmra.mrb[0].mxu0 %vm98_vm1, %v82_v3  ;;  %v498_v26 = vld [vmem:[#allocation8 + $0x30] sm:$0xff]   ;;  %v499_v27 = vld [vmem:[#allocation8 + $0x38] sm:$0xff]  }
  0x50   :  { %470 = vmatprep.mubr.msk.bf16.mxu0 %vm627_vm0, %v626_v0  ;;  %437 = vmatpush3.bf16.msra.mxu1 %v485_v5  ;;  %v390_v28 = vld [vmem:[%s771_s4] ss:$0 sm:$0xff]  ;;  %s376_s4 = sshll.u32 %s628_s28, 4  ;;  %s377_s4 = int_to_ptr.vmem [resolvable:$true] %s376_s4 }
  0x51   :  { %438 = vmatprep.subr.bf16.mxu1 %v626_v0  ;;  %455 = vmatpush3.bf16.msra.mxu0 %v492_v12  ;;  %v399_v36 = vld [vmem:[%s773_s6] ss:$0 sm:$0xff]  ;;  %s590_s29 = scalar_lea.vmem %s377_s4, 128  ;;  %p595_p5 = scmp.lt.s32.totalorder %s377_s4, %s377_s4 }
  0x52   :  { %456 = vmatprep.subr.bf16.mxu0 %v626_v0  ;;  %p591_p4 = scmp.ne.s32.totalorder %s377_s4, %s590_s29  ;;  %p596_p6 = scmp.lt.s32.totalorder %s590_s29, %s590_s29 }
  0x54   :  { %439 = vmatpush3.bf16.msra.mxu1 %v486_v6  ;;  %p597_p7 = por %p596_p6, %p595_p5 }
  0x55   :  { %440 = vmatprep.subr.bf16.mxu1 %v626_v0  ;;  %457 = vmatpush3.bf16.msra.mxu0 %v493_v13 }
  0x56   :  { %458 = vmatprep.subr.bf16.mxu0 %v626_v0  ;;  %p598_p8 = pnand %p597_p7, %p591_p4 }
  0x58   :  { %441 = vmatpush3.bf16.msra.mxu1 %v487_v7 }
  0x59   :  { %442 = vmatprep.subr.bf16.mxu1 %v626_v0  ;;  %459 = vmatpush3.bf16.msra.mxu0 %v494_v14 }
  0x5a   :  { %460 = vmatprep.subr.bf16.mxu0 %v626_v0 }
  0x5c   :  { %443 = vmatpush3.bf16.msra.mxu1 %v488_v8 }
  0x5d   :  { %444 = vmatprep.subr.bf16.mxu1 %v626_v0  ;;  %461 = vmatpush3.bf16.msra.mxu0 %v495_v15 }
  0x5e   :  { %462 = vmatprep.subr.bf16.mxu0 %v626_v0 }
  0x60   :  { %445 = vmatpush3.bf16.msra.mxu1 %v489_v9 }
  0x61   :  { %446 = vmatprep.subr.bf16.mxu1 %v626_v0  ;;  %463 = vmatpush3.bf16.msra.mxu0 %v496_v16 }
  0x62   :  { %464 = vmatprep.subr.bf16.mxu0 %v626_v0 }
  0x64   :  { %447 = vmatpush3.bf16.msra.mxu1 %v490_v10 }
  0x65   :  { %448 = vmatprep.subr.bf16.mxu1 %v626_v0  ;;  %465 = vmatpush3.bf16.msra.mxu0 %v497_v17 }
  0x66   :  { %466 = vmatprep.subr.bf16.mxu0 %v626_v0 }
  0x68   :  { %449 = vmatpush3.bf16.msra.mxu1 %v491_v11 }
  0x69   :  { %467 = vmatpush3.bf16.msra.mxu0 %v498_v26 }
  0x6a   :  { %468 = vmatprep.subr.bf16.mxu0 %v626_v0 }
  0x6d   :  { %469 = vmatpush3.bf16.msra.mxu0 %v499_v27 }
 0x122   :  { %v136_v19 = vpop.f32.mrb[0].mxu0 }
 0x123   :  { %v137_v20 = vadd.f32 %v387_v18, %v136_v19  ;;  %v432_v21 = vpop.f32.mrb[1].mxu0 }
 0x124   :  { %v139_v22 = vpop.f32.mrb[2].mxu0 }
 0x125   :  { %v142_v23 = vmax.f32 %v137_v20, 0.0  ;;  %v433_v24 = vpop.f32.mrb[3].mxu0 }
 0x127   :  { %v143_v25 = vpack.c.bf16 %v142_v23, %v142_v23 }
 0x129   :  { %451 = vmatmul.mubr.bf16.vlgmr.msra.gmra.mrb[0].mxu1 %v143_v25 }
 0x1fc   :  { %v249_v29 = vpop.f32.mrb[0].mxu1 }
 0x1fd   :  { %v250_v30 = vadd.f32 %v390_v28, %v249_v29  ;;  %v452_v31 = vpop.f32.mrb[1].mxu1 }
 0x1fe   :  { %v252_v32 = vpop.f32.mrb[2].mxu1 }
 0x1ff   :  { %v255_v33 = vmax.f32 %v250_v30, 0.0  ;;  %v453_v34 = vpop.f32.mrb[3].mxu1 }
 0x201   :  { %v256_v35 = vpack.c.bf16 %v255_v33, %v255_v33 }
 0x203   :  { %471 = vmatmul.mubr.bf16.vlgmr.msra.gmra.mrb[4].mxu0 %v256_v35 }
 0x2d6   :  { %v362_v37 = vpop.f32.mrb[4].mxu0 }
 0x2d7   :  { %v363_v38 = vadd.f32 %v399_v36, %v362_v37  ;;  %v472_v39 = vpop.f32.mrb[5].mxu0 }
 0x2d8   :  { %v365_v40 = vpop.f32.mrb[6].mxu0 }
 0x2d9   :  { %500 = vtanh.f32 %v363_v38  ;;  %v473_v41 = vpop.f32.mrb[7].mxu0 }
 0x2e3   :  { %v501_v42 = vpop.eup %500 }
 0x2e4   :  { %369 = vst [vmem:[#allocation10] sm:$0xff] %v501_v42 }
 0x2e5   :  { %601 = shalt.err (!%p598_p8)
}
 0x2e6   :  { %s602_s8 = scalar_lea.hbm %s774_s7, 128 }
 0x2e7   :  { %p603_p9 = scmp.ne.s32.totalorder %s774_s7, %s602_s8  ;;  %p606_p10 = scmp.lt.u32.totalorder %s602_s8, %s774_s7 }
 0x2e9   :  { %p608_p11 = pnand %p606_p10, %p603_p9 }
 0x2eb   :  { %611 = shalt.err (!%p608_p11)
}
 0x2ec   :  { %379 = dma.vmem_to_hbm [thread:$0]  %s377_s4, 128, %s774_s7, [#allocation4]  }
 0x2ed   :  { %618 = dma.done.wait [#allocation4], 128  }
 0x2ee   :  { %619 = vsyncadd [#allocation4], 4294967168 }
 0x2ef   :  { %383 = vsyncpa [#allocation3], 1 }
 0x2f0   :  { %384 = vsyncpa [#allocation6], 1 }
 0x2f1   :  { %385 = vsyncpa [#allocation9], 1 }
 0x2f2   :  { %386 = vsyncpa [#allocation4], 1 }

</bundles_post_ra>
